<compile_context>
chip_gen: v7x
topology: tpu7x:2x2x1
jax: 0.10.0
libtpu: 0.0.40
codegen_flags: <defaults>
</compile_context>

<pallas_src>
import jax
import jax.numpy as jnp
from jax.experimental import pallas as pl
from jax.experimental.pallas import tpu as pltpu


# --------------------------------------------------------------------------- #
# One-time parameter preparation (done at init, NOT per forward call).
# --------------------------------------------------------------------------- #
def _pick_cv_tile(cv, target=512):
    """Largest multiple of 128 that divides Cv and is <= target; Cv itself
    (single reduction step) when Cv is small or not 128-divisible."""
    if cv <= target or cv % 128 != 0:
        return cv
    tk = max((min(target, cv) // 128) * 128, 128)
    while cv % tk != 0:
        tk -= 128
    return tk


def prepare_attention_params(params, compute_dtype=jnp.float32, cv_tile=512):
    """Transpose + cast + chunk the weights once so attention_pallas does no
    per-call weight HBM round trips (feedback #1)."""
    wv, bv, wq, bq, wx, bx = params        # wv:[Cv,M] bv:[M] wq:[Cq,M] bq:[M] wx:[M,G] bx:[G]
    Cv, M = wv.shape
    G = wx.shape[1]
    tk = _pick_cv_tile(Cv, cv_tile)
    kt = Cv // tk
    # [Cv,M] -> [M,Cv] -> [KT,M,TK]: chunk k == wv.T[:, k*tk:(k+1)*tk].  The kernel
    # picks chunk k via a leading-axis index; the whole weight stays resident.
    wvt_chunks = (jnp.asarray(wv, compute_dtype).T
                  .reshape(M, kt, tk).transpose(1, 0, 2))
    return {
        "wvt_chunks": wvt_chunks,                           # [KT, M, TK] compute dtype
        "wxt": jnp.asarray(wx, compute_dtype).T,            # [G, M]      compute dtype
        "wq": jnp.asarray(wq, jnp.float32),                 # [Cq, M]     (tiny q path, f32)
        "qb_bias": jnp.asarray(bq + bv, jnp.float32),       # [M] q_lin + v_conv biases folded
        "bx": jnp.asarray(bx, jnp.float32).reshape(G, 1),   # [G, 1]
    }


# --------------------------------------------------------------------------- #
# Kernel
# --------------------------------------------------------------------------- #
def _make_kernel(num_k):
    """num_k = number of Cv-reduction steps (static, specializes the kernel)."""

    def _epilogue(v_mid, qb_ref, wxt_ref, bx_ref, o_ref):
        # tile_2d_over_nd == lane-broadcast of the per-batch q column, then ReLU.
        x = jnp.maximum(v_mid + qb_ref[0], 0.0)                     # [M, HW] f32
        x = x.astype(wxt_ref.dtype)
        out = jnp.dot(wxt_ref[...], x,
                      preferred_element_type=jnp.float32) + bx_ref[...]
        o_ref[0] = out.astype(o_ref.dtype)                          # [G, HW]

    if num_k == 1:
        def kernel(v_ref, qb_ref, wvt_ref, wxt_ref, bx_ref, o_ref):
            v = v_ref[0]                                            # [Cv, HW]
            if v.dtype != wvt_ref.dtype:
                v = v.astype(wvt_ref.dtype)                         # in-VMEM cast, no HBM cost
            v_mid = jnp.dot(wvt_ref[0], v,
                            preferred_element_type=jnp.float32)     # [M, HW] f32
            _epilogue(v_mid, qb_ref, wxt_ref, bx_ref, o_ref)
        return kernel

    def kernel(v_ref, qb_ref, wvt_ref, wxt_ref, bx_ref, o_ref, acc_ref):
        k = pl.program_id(1)

        @pl.when(k == 0)
        def _():
            acc_ref[...] = jnp.zeros_like(acc_ref)

        v = v_ref[0]                                                # [TK, HW] chunk
        if v.dtype != wvt_ref.dtype:
            v = v.astype(wvt_ref.dtype)
        # Resident weight, chunk selected by leading-axis index: no re-DMA per k.
        acc_ref[...] += jnp.dot(wvt_ref[k], v,
                                preferred_element_type=jnp.float32)

        @pl.when(k == num_k - 1)
        def _():
            _epilogue(acc_ref[...], qb_ref, wxt_ref, bx_ref, o_ref)

    return kernel


# --------------------------------------------------------------------------- #
# Wrapper
# --------------------------------------------------------------------------- #
def _vmem_limit_bytes(KT, TK, M, G, HW, v_itemsize, w_itemsize):
    r8 = lambda x: -(-x // 8) * 8
    r128 = lambda x: -(-x // 128) * 128
    hw = r128(HW)
    est = (2 * r8(TK) * hw * v_itemsize            # v (double buffered)
           + KT * r8(M) * r128(TK) * w_itemsize    # resident chunked v_conv weight (x1)
           + r8(G) * r128(M) * w_itemsize          # x_conv weight (x1)
           + 2 * r8(M) * 128 * 4                   # qb column (tile-padded)
           + r8(G) * 128 * 4                       # bx
           + 2 * r8(G) * hw * 4                    # output (double buffered)
           + (r8(M) * hw * 4 if KT > 1 else 0))    # f32 accumulator scratch
    if est <= 12 * 1024 * 1024:
        return None                                # scoped default (16/32 MiB) is plenty
    return int(min(2 * est, 96 * 1024 * 1024))


def attention_pallas(v_nchw, q, prepared):
    """v_nchw: [N, Cv, H, W] (any float dtype), q: [N, Cq].  Returns [N, G, H, W] f32."""
    wvt = prepared["wvt_chunks"]                   # [KT, M, TK]
    wxt = prepared["wxt"]                          # [G, M]
    bx = prepared["bx"]                            # [G, 1]
    KT, M, TK = wvt.shape
    G = wxt.shape[0]
    N, Cv, H, W = v_nchw.shape
    assert Cv == KT * TK, (Cv, KT, TK)
    HW = H * W

    # Hoisted 1-row q projection, both biases folded: qb[n] = q[n] @ wq + bq + bv.
    qb = (q.astype(jnp.float32) @ prepared["wq"]
          + prepared["qb_bias"]).reshape(N, M, 1)

    # NCHW -> channels-first, spatial-in-lanes: free reshape, no pad, no cast.
    v_flat = v_nchw.reshape(N, Cv, HW)

    kernel = _make_kernel(KT)
    scratch_shapes = [] if KT == 1 else [pltpu.VMEM((M, HW), jnp.float32)]

    grid_spec = pltpu.PrefetchScalarGridSpec(
        num_scalar_prefetch=0,
        grid=(N, KT),                              # N parallel x KT reduction steps
        in_specs=[
            # v: one (batch, Cv-chunk) tile per step -> DMA pipelined against MXU.
            pl.BlockSpec((1, TK, HW), lambda n, k: (n, k, 0)),
            # qb: per-batch column (re-fetched only when n changes; tiny).
            # TODO(synk): lane-dense [N,1,M] variant (feedback #9) needs an
            # in-kernel [1,M]->[M,1] relayout; skipped as a low-value micro-opt.
            pl.BlockSpec((1, M, 1), lambda n, k: (n, 0, 0)),
            # Grid-invariant operands: constant index_map + single buffer.
            pl.BlockSpec((KT, M, TK), lambda n, k: (0, 0, 0),
                         pipeline_mode=pl.Buffered(1)),
            pl.BlockSpec((G, M), lambda n, k: (0, 0),
                         pipeline_mode=pl.Buffered(1)),
            pl.BlockSpec((G, 1), lambda n, k: (0, 0),
                         pipeline_mode=pl.Buffered(1)),
        ],
        out_specs=pl.BlockSpec((1, G, HW), lambda n, k: (n, 0, 0)),
        scratch_shapes=scratch_shapes,
    )

    out_flat = pl.pallas_call(
        kernel,
        out_shape=jax.ShapeDtypeStruct((N, G, HW), jnp.float32),
        grid_spec=grid_spec,
        compiler_params=pltpu.CompilerParams(
            dimension_semantics=("parallel", "arbitrary"),
            vmem_limit_bytes=_vmem_limit_bytes(
                KT, TK, M, G, HW, v_flat.dtype.itemsize, wvt.dtype.itemsize),
        ),
    )(v_flat, qb, wvt, wxt, bx)

    # [N, G, HW] -> [N, G, H, W]: pure reshape, no transpose.
    return out_flat.reshape(N, G, H, W)


# --------------------------------------------------------------------------- #
# Plain-JAX reference (mirrors the PyTorch forward, dropout = identity).
# --------------------------------------------------------------------------- #
def reference(v_nchw, q, params):
    wv, bv, wq, bq, wx, bx = params
    hp = jax.lax.Precision.HIGHEST
    v_mid = jnp.einsum('nchw,cm->nmhw', v_nchw, wv, precision=hp) \
        + bv[None, :, None, None]
    q_mid = q @ wq + bq
    x = jax.nn.relu(v_mid + q_mid[:, :, None, None])
    out = jnp.einsum('nmhw,mg->nghw', x, wx, precision=hp) \
        + bx[None, :, None, None]
    return out


# --------------------------------------------------------------------------- #
# Demo / self-test
# --------------------------------------------------------------------------- #
if __name__ == "__main__":
    def run_case(N, Cv, H, W, Cq, M, G, compute_dtype, cv_tile, v_dtype,
                 atol, rtol, seed=0):
        key = jax.random.PRNGKey(seed)
        ks = jax.random.split(key, 8)
        v = jax.random.normal(ks[0], (N, Cv, H, W), jnp.float32)
        q = jax.random.normal(ks[1], (N, Cq), jnp.float32)
        wv = jax.random.normal(ks[2], (Cv, M), jnp.float32) * 0.1
        bv = jax.random.normal(ks[3], (M,), jnp.float32) * 0.1
        wq = jax.random.normal(ks[4], (Cq, M), jnp.float32) * 0.1
        bq = jax.random.normal(ks[5], (M,), jnp.float32) * 0.1
        wx = jax.random.normal(ks[6], (M, G), jnp.float32) * 0.1
        bx = jax.random.normal(ks[7], (G,), jnp.float32) * 0.1
        params = (wv, bv, wq, bq, wx, bx)

        ref = reference(v, q, params)
        prepared = prepare_attention_params(
            params, compute_dtype=compute_dtype, cv_tile=cv_tile)
        v_in = v.astype(v_dtype)     # "producer emits the compute dtype" path
        out = jax.jit(attention_pallas)(v_in, q, prepared)
        out = jax.block_until_ready(out)
        assert out.shape == (N, G, H, W), out.shape
        err = float(jnp.max(jnp.abs(out - ref)))
        assert jnp.allclose(out, ref, atol=atol, rtol=rtol), f"max abs err {err}"

    # 1) Small f32 case, single reduction step (KT == 1): exact semantics check.
    run_case(N=2, Cv=4, H=16, W=16, Cq=8, M=32, G=2,
             compute_dtype=jnp.float32, cv_tile=512, v_dtype=jnp.float32,
             atol=1e-4, rtol=1e-4)

    # 2) Same shapes, bf16 storage + compute (f32 accumulation): bandwidth path.
    run_case(N=2, Cv=4, H=16, W=16, Cq=8, M=32, G=2,
             compute_dtype=jnp.bfloat16, cv_tile=512, v_dtype=jnp.bfloat16,
             atol=5e-2, rtol=5e-2)

    # 3) Exercise the Cv-tiled reduction grid (KT == 2) with the resident,
    #    single-buffered chunked weight and the f32 accumulator scratch.
    run_case(N=2, Cv=256, H=16, W=16, Cq=8, M=32, G=2,
             compute_dtype=jnp.float32, cv_tile=128, v_dtype=jnp.float32,
             atol=1e-3, rtol=1e-3, seed=1)

    print("KERNEL_OK")
</pallas_src>

<mosaic_0001>
module attributes {stable_mosaic.version = 11 : i64} {
  func.func @kernel(%arg0: i32, %arg1: i32, %arg2: memref<1x4x256xf32, #tpu.memory_space<vmem>>, %arg3: memref<1x32x1xf32, #tpu.memory_space<vmem>>, %arg4: memref<1x32x4xf32, #tpu.memory_space<vmem>>, %arg5: memref<2x32xf32, #tpu.memory_space<vmem>>, %arg6: memref<2x1xf32, #tpu.memory_space<vmem>>, %arg7: memref<1x2x256xf32, #tpu.memory_space<vmem>>) attributes {dimension_semantics = [#tpu.dimension_semantics<parallel>, #tpu.dimension_semantics<arbitrary>], iteration_bounds = array<i64: 2, 1>, scalar_prefetch = 0 : i64, scratch_operands = 0 : i64, tpu.core_type = #tpu.core_type<tc>, window_params = [{transform_indices = @transform_0, window_bounds = array<i64: 1, 4, 256>}, {transform_indices = @transform_1, window_bounds = array<i64: 1, 32, 1>}, {pipeline_mode = #tpu.pipeline_mode<synchronous>, transform_indices = @transform_2, window_bounds = array<i64: 1, 32, 4>}, {pipeline_mode = #tpu.pipeline_mode<synchronous>, transform_indices = @transform_3, window_bounds = array<i64: 2, 32>}, {pipeline_mode = #tpu.pipeline_mode<synchronous>, transform_indices = @transform_4, window_bounds = array<i64: 2, 1>}, {transform_indices = @transform_5, window_bounds = array<i64: 1, 2, 256>}]} {
    %c0 = arith.constant 0 : index
    %c0_0 = arith.constant 0 : index
    %c0_1 = arith.constant 0 : index
    %0 = vector.load %arg2[%c0, %c0_0, %c0_1] : memref<1x4x256xf32, #tpu.memory_space<vmem>>, vector<1x4x256xf32>
    %1 = vector.shape_cast %0 : vector<1x4x256xf32> to vector<4x256xf32>
    %c0_2 = arith.constant 0 : index
    %c0_3 = arith.constant 0 : index
    %c0_4 = arith.constant 0 : index
    %2 = vector.load %arg4[%c0_2, %c0_3, %c0_4] : memref<1x32x4xf32, #tpu.memory_space<vmem>>, vector<1x32x4xf32>
    %3 = vector.shape_cast %2 : vector<1x32x4xf32> to vector<32x4xf32>
    %cst = arith.constant dense<0.000000e+00> : vector<32x256xf32>
    %4 = tpu.matmul %3, %1, %cst {dimension_numbers = #tpu.dot_dimension_numbers<[1], [0], [0], [1], [0, 0, 1, 1], [], []>} : vector<32x4xf32>, vector<4x256xf32>, vector<32x256xf32> -> vector<32x256xf32>
    %c0_5 = arith.constant 0 : index
    %c0_6 = arith.constant 0 : index
    %c0_7 = arith.constant 0 : index
    %5 = vector.load %arg3[%c0_5, %c0_6, %c0_7] : memref<1x32x1xf32, #tpu.memory_space<vmem>>, vector<1x32x1xf32>
    %6 = vector.shape_cast %5 : vector<1x32x1xf32> to vector<32x1xf32>
    %7 = vector.broadcast %6 : vector<32x1xf32> to vector<32x256xf32>
    %8 = arith.addf %4, %7 : vector<32x256xf32>
    %cst_8 = arith.constant 0.000000e+00 : f32
    %9 = vector.broadcast %cst_8 : f32 to vector<32x256xf32>
    %10 = arith.maximumf %8, %9 : vector<32x256xf32>
    %c0_9 = arith.constant 0 : index
    %c0_10 = arith.constant 0 : index
    %11 = vector.load %arg5[%c0_9, %c0_10] : memref<2x32xf32, #tpu.memory_space<vmem>>, vector<2x32xf32>
    %cst_11 = arith.constant dense<0.000000e+00> : vector<2x256xf32>
    %12 = tpu.matmul %11, %10, %cst_11 {dimension_numbers = #tpu.dot_dimension_numbers<[1], [0], [0], [1], [0, 0, 1, 1], [], []>} : vector<2x32xf32>, vector<32x256xf32>, vector<2x256xf32> -> vector<2x256xf32>
    %c0_12 = arith.constant 0 : index
    %c0_13 = arith.constant 0 : index
    %13 = vector.load %arg6[%c0_12, %c0_13] : memref<2x1xf32, #tpu.memory_space<vmem>>, vector<2x1xf32>
    %14 = vector.broadcast %13 : vector<2x1xf32> to vector<2x256xf32>
    %15 = arith.addf %12, %14 : vector<2x256xf32>
    %c0_14 = arith.constant 0 : index
    %c0_15 = arith.constant 0 : index
    %c0_16 = arith.constant 0 : index
    %16 = vector.load %arg7[%c0_14, %c0_15, %c0_16] : memref<1x2x256xf32, #tpu.memory_space<vmem>>, vector<1x2x256xf32>
    %17 = vector.shape_cast %16 : vector<1x2x256xf32> to vector<2x256xf32>
    %18 = vector.shape_cast %15 : vector<2x256xf32> to vector<1x2x256xf32>
    tpu.vector_store %arg7[%c0_14, %c0_15, %c0_16], %18 {strides = array<i32>} : memref<1x2x256xf32, #tpu.memory_space<vmem>>, vector<1x2x256xf32>,
    return
  }
  func.func @transform_0(%arg0: i32, %arg1: i32) -> (i32, i32, i32) {
    %c0_i32 = arith.constant 0 : i32
    %c0_i32_0 = arith.constant 0 : i32
    return %arg0, %arg1, %c0_i32 : i32, i32, i32
  }
  func.func @transform_1(%arg0: i32, %arg1: i32) -> (i32, i32, i32) {
    %c0_i32 = arith.constant 0 : i32
    %c0_i32_0 = arith.constant 0 : i32
    %c0_i32_1 = arith.constant 0 : i32
    return %arg0, %c0_i32, %c0_i32_0 : i32, i32, i32
  }
  func.func @transform_2(%arg0: i32, %arg1: i32) -> (i32, i32, i32) {
    %c0_i32 = arith.constant 0 : i32
    %c0_i32_0 = arith.constant 0 : i32
    %c0_i32_1 = arith.constant 0 : i32
    %c0_i32_2 = arith.constant 0 : i32
    return %c0_i32, %c0_i32_0, %c0_i32_1 : i32, i32, i32
  }
  func.func @transform_3(%arg0: i32, %arg1: i32) -> (i32, i32) {
    %c0_i32 = arith.constant 0 : i32
    %c0_i32_0 = arith.constant 0 : i32
    %c0_i32_1 = arith.constant 0 : i32
    return %c0_i32, %c0_i32_0 : i32, i32
  }
  func.func @transform_4(%arg0: i32, %arg1: i32) -> (i32, i32) {
    %c0_i32 = arith.constant 0 : i32
    %c0_i32_0 = arith.constant 0 : i32
    %c0_i32_1 = arith.constant 0 : i32
    return %c0_i32, %c0_i32_0 : i32, i32
  }
  func.func @transform_5(%arg0: i32, %arg1: i32) -> (i32, i32, i32) {
    %c0_i32 = arith.constant 0 : i32
    %c0_i32_0 = arith.constant 0 : i32
    %c0_i32_1 = arith.constant 0 : i32
    return %arg0, %c0_i32, %c0_i32_0 : i32, i32, i32
  }
}

</mosaic_0001>

<bundles_post_ra>
// kernel: attention_pallas.1
= control target key start
LH: loop header
LB: loop body
LE: loop exit
PB: predicated region body
PF: predicated region fallthrough
CT: control target
= control target key end

     0   :  { %s712_s18 = smov 0   ;;  %s714_s19 = smov 0   ;;  %s775_s0 = inlined_call_operand.vmem [shape: f32[2,4,256], index: 0, kind: input, shape index: {}]   ;;  %s776_s1 = inlined_call_operand.vmem [shape: f32[2,32,1], index: 1, kind: input, shape index: {}]   ;;  %s777_s2 = inlined_call_operand.vmem [shape: f32[1,32,4], index: 2, kind: input, shape index: {}]   ;;  %s778_s3 = inlined_call_operand.vmem [shape: f32[2,32], index: 3, kind: input, shape index: {}]   ;;  %s779_s4 = inlined_call_operand.vmem [shape: f32[2,1], index: 4, kind: input, shape index: {}]   ;;  %s780_s5 = inlined_call_operand.vmem [shape: f32[2,2,256], index: 5, kind: output, shape index: {}]  }
   0x1   :  { %s716_s20 = smov 0  }
   0x2 LB: > { %s27_s21 = sadd.s32 1, %s674_s19  ;;  %p599_p0 = scmp.ge.s32.totalorder %s678_s20, 1  ;;  %s678_s20 = sphi %s716_s20, %s15_s20   ;;  %s674_s19 = sphi %s714_s19, %s782_s19   ;;  %s670_s18 = sphi %s712_s18, %s781_s18  }
   0x3   : > { %p29_p1 = scmp.ge.s32.totalorder %s27_s21, 2  ;;  %p215_p2 = scmp.lt.s32.totalorder %s678_s20, 3 }
   0x5   : > { %s784_s21 = smov (%p29_p1, %s27_s21), 0  ;;  %p216_p3 = pnand %p599_p0, %p215_p2 }
   0x6   : > { %p252_p4 = scmp.lt.s32.totalorder (!%p216_p3), %s670_s18, 1  ;;  %v680_v0 = vmov (!%p216_p3), 0.0   ;;  %v681_v1 = vmov (!%p216_p3), 0   ;;  %vm315_vm0 = vcmask (!%p216_p3), 1043456   ;;  %v272_v6 = vld [vmem:[%s777_s2] sm:$0xff] (!%p216_p3)  ;;  %vm302_vm1 = vcmask (!%p216_p3), 31744  }
   0x7   : > { %219 = sbr.rel (%p216_p3) target bundleno = 475 (0x1db), region = 40  ;;  %384 = vmatprep.mubr.f32.mxu0 (!%p216_p3), %v680_v0  ;;  %492 = vmatprep.mubr.f32.mxu1 (!%p216_p3), %v680_v0  ;;  %v273_v9 = vld [vmem:[%s777_s2 + $0x8] sm:$0xff] (!%p216_p3)  ;;  %v418_v10 = vld [vmem:[%s779_s4] sm:$0x3] (!%p216_p3)  ;;  %v274_v11 = vld [vmem:[%s777_s2 + $0x10] sm:$0xff] (!%p216_p3)  ;;  %vm424_vm2 = vcmask (!%p216_p3), 261120  }
   0x8   : > { %653 = vset.pattern.permute.xlu0 (!%p216_p3), %v681_v1  ;;  %654 = vset.pattern.permute.xlu1 (!%p216_p3), %v681_v1  ;;  %v275_v12 = vld [vmem:[%s777_s2 + $0x18] sm:$0xff] (!%p216_p3)  ;;  %v417_v45 = vld [vmem:[%s778_s3] sm:$0x3] (!%p216_p3) }
   0xe   : > { %s786_s18 = smov (!%p252_p4, %s670_s18), 1 }
   0xf   : > { %s616_s22 = sshll.u32 %s786_s18, 3  ;;  %s617_s23 = sshll.u32 %s786_s18, 5 }
  0x10   : > { %s260_s26 = scalar_lea.vmem %s775_s0, %s616_s22  ;;  %s265_s29 = scalar_lea.vmem %s776_s1, %s617_s23 }
  0x11   : > { %v271_v2 = vld [vmem:[%s260_s26] sm:$0xff]  ;;  %v278_v5 = vld [vmem:[%s265_s29 + $0x10] sm:$0xff]  ;;  %v277_v7 = vld [vmem:[%s265_s29 + $0x8] sm:$0xff]  ;;  %s618_s17 = sshll.u32 %s786_s18, 2 }
  0x12   : > { %v276_v3 = vld [vmem:[%s265_s29] sm:$0xff]  ;;  %v301_v4 = vcombine.high %v271_v2, %v271_v2  ;;  %292 = vperm.xlu1 %654, %v278_v5   ;;  %v279_v8 = vld [vmem:[%s265_s29 + $0x18] sm:$0xff]  ;;  %s270_s24 = scalar_lea.vmem %s780_s5, %s618_s17 }
  0x13   : > { %282 = vperm.xlu0 %653, %v276_v3  }
  0x14   : > { %606 = vmatprep.subr.msk.mxu0 %vm315_vm0, %v301_v4 }
  0x15   : > { %607 = vmatpush1.msk.msra.mxu0 %vm315_vm0, %v271_v2 }
  0x16   : > { %608 = vmatmul.mubr.msk.f32.vlgmr.msra.gmra.mrb[0].mxu0 %vm302_vm1, %v272_v6  ;;  %297 = vperm.xlu1 %654, %v279_v8  }
  0x17   : > { %287 = vperm.xlu0 %653, %v277_v7   ;;  %390 = vmatprep.mubr.f32.mxu0 %v680_v0 }
  0x1a   : > { %609 = vmatmul.mubr.msk.f32.gmra.mrb[2].mxu0 %vm302_vm1, %v273_v9 }
  0x1b   : > { %421 = vperm.xlu0 %653, %v418_v10   ;;  %396 = vmatprep.mubr.f32.mxu0 %v680_v0 }
  0x1e   : > { %610 = vmatmul.mubr.msk.f32.gmra.mrb[4].mxu0 %vm302_vm1, %v274_v11 }
  0x1f   : > { %402 = vmatprep.mubr.f32.mxu0 %v680_v0 }
  0x22   : > { %611 = vmatmul.mubr.msk.f32.gmra.mrb[6].mxu0 %vm302_vm1, %v275_v12 }
  0x91   : > { %v293_v22 = vpop.permute.xlu1 %292 }
  0x92   : > { %v283_v13 = vpop.permute.xlu0 %282 }
  0x95   : > { %v298_v33 = vpop.permute.xlu1 %297 }
  0x96   : > { %v288_v17 = vpop.permute.xlu0 %287 }
  0x9a   : > { %v422_v46 = vpop.permute.xlu0 %421 }
  0xe9   : > { %v386_v14 = vpop.f32.mrb[0].mxu0 }
  0xea   : > { %v388_v15 = vpop.f32.mrb[1].mxu0  ;;  %v387_v16 = vadd.f32 %v386_v14, %v283_v13 }
  0xeb   : > { %v389_v18 = vadd.f32 %v388_v15, %v283_v13 }
  0xec   : > { %v409_v24 = vmax.f32 %v387_v16, 0.0 }
  0xed   : > { %v392_v19 = vpop.f32.mrb[2].mxu0  ;;  %v410_v26 = vmax.f32 %v389_v18, 0.0 }
  0xee   : > { %v393_v20 = vadd.f32 %v392_v19, %v288_v17  ;;  %v394_v21 = vpop.f32.mrb[3].mxu0 }
  0xef   : > { %v395_v23 = vadd.f32 %v394_v21, %v288_v17 }
  0xf0   : > { %v411_v25 = vmax.f32 %v393_v20, 0.0 }
  0xf1   : > { %v412_v27 = vmax.f32 %v395_v23, 0.0  ;;  %v398_v28 = vpop.f32.mrb[4].mxu0 }
  0xf2   : > { %v400_v29 = vpop.f32.mrb[5].mxu0  ;;  %v621_v30 = vpack.c.bf16 %v411_v25, %v409_v24  ;;  %v399_v32 = vadd.f32 %v398_v28, %v293_v22 }
  0xf3   : > { %v619_v31 = vpack.c.bf16 %v412_v27, %v410_v26  ;;  %v401_v34 = vadd.f32 %v400_v29, %v293_v22 }
  0xf4   : > { %v413_v39 = vmax.f32 %v399_v32, 0.0 }
  0xf5   : > { %v404_v35 = vpop.f32.mrb[6].mxu0  ;;  %620 = vmatprep.subr.bf16.mxu1 %v619_v31  ;;  %v414_v41 = vmax.f32 %v401_v34, 0.0 }
  0xf6   : > { %v405_v36 = vadd.f32 %v404_v35, %v298_v33  ;;  %v406_v37 = vpop.f32.mrb[7].mxu0  ;;  %622 = vmatpush1.bf16.msra.mxu1 %v621_v30 }
  0xf7   : > { %v407_v38 = vadd.f32 %v406_v37, %v298_v33 }
  0xf8   : > { %v415_v40 = vmax.f32 %v405_v36, 0.0 }
  0xf9   : > { %v416_v42 = vmax.f32 %v407_v38, 0.0 }
  0xfa   : > { %v625_v43 = vpack.c.bf16 %v415_v40, %v413_v39 }
  0xfb   : > { %v623_v44 = vpack.c.bf16 %v416_v42, %v414_v41 }
  0xfd   : > { %624 = vmatprep.subr.bf16.mxu1 %v623_v44 }
  0xfe   : > { %626 = vmatpush1.bf16.msra.mxu1 %v625_v43 }
 0x101   : > { %612 = vmatmul.mubr.msk.f32.vlgmr.msra.gmra.mrb[0].mxu1 %vm424_vm2, %v417_v45 }
 0x1d4   : > { %v494_v47 = vpop.f32.mrb[0].mxu1 }
 0x1d5   : > { %v495_v48 = vadd.f32 %v494_v47, %v422_v46  ;;  %v496_v49 = vpop.f32.mrb[1].mxu1 }
 0x1d6   : > { %v497_v50 = vadd.f32 %v496_v49, %v422_v46 }
 0x1d8   : > { %v501_v51 = vcombine.low %v495_v48, %v497_v50 }
 0x1da   : > { %613 = vst.sshfl [vmem:[%s270_s24] sm:$0x33 pattern:$0x76325410] %v501_v51 }
 0x1db PF: > { %s15_s20 = sadd.s32 1, %s678_s20   ;;  %s781_s18 = smov %s674_s19 }
 0x1dc   : > { %p12_p5 = scmp.ge.s32.totalorder %s15_s20, 4   ;;  %s782_s19 = smov %s784_s21 }
 0x1de   :  { %14 = sbr.rel (!%p12_p5) target bundleno = 2 (0x2), region = 73 }

</bundles_post_ra>
